<compile_context>
chip_gen: v5e
topology: v5e:2x2
jax: 0.10.0
libtpu: 0.0.40
codegen_flags: <defaults>
</compile_context>

<pallas_src>
import functools

import jax
import jax.numpy as jnp
from jax.experimental import pallas as pl
from jax.experimental.pallas import tpu as pltpu

NUM_TASKS = 5
ROWS = 8 * NUM_TASKS          # 40 sublanes: multiple of 8 -> no sublane padding waste
_MAX_COL_TILE = 16384         # lanes per grid step (x 40 rows x 4 B = 2.5 MiB / input block)


def _round_up(x, m):
    return (x + m - 1) // m * m


def _bce_sum_kernel(preds_ref, labels_ref, out_ref):
    """preds/labels block: (ROWS, tbc); out block: (ROWS, 1) per-core partial sums."""
    @pl.when(pl.program_id(1) == 0)
    def _init():
        out_ref[...] = jnp.zeros_like(out_ref)

    # nn.BCELoss semantics: -(y*log(p) + (1-y)*log(1-p)), logs clamped at -100.
    # Keep the clamp *before* the multiply so padded (p=1, y=1) lanes contribute 0.
    p = preds_ref[...]                                         # (ROWS, tbc)
    y = labels_ref[...]
    log_p = jnp.maximum(jnp.log(p), -100.0)
    log_1mp = jnp.maximum(jnp.log(1.0 - p), -100.0)
    bce = -(y * log_p + (1.0 - y) * log_1mp)                   # (ROWS, tbc)
    out_ref[...] += jnp.sum(bce, axis=-1, keepdims=True)       # (ROWS, 1)


def _bce_task_sums(preds_t, labels_t):
    """preds_t / labels_t: (NUM_TASKS, B) f32 -> (NUM_TASKS,) per-task BCE sums."""
    _, batch = preds_t.shape
    cols = pl.cdiv(_round_up(batch, 8), 8)          # columns of the (40, .) layout
    ncores = 2 if cols >= 256 else 1                # 2-way split (uses both TCs on v7x)
    ntiles = max(_round_up(pl.cdiv(cols, _MAX_COL_TILE), ncores), ncores)
    tbc = _round_up(pl.cdiv(cols, ntiles), 128)     # lane tile, multiple of 128
    cols_pad = ntiles * tbc
    steps = ntiles // ncores                        # inner ("arbitrary") grid extent

    b_pad = 8 * cols_pad
    if b_pad != batch:
        # TODO(synk): ragged tails could be masked in-kernel (broadcasted_iota vs a
        # scalar valid-count) to avoid this pad copy; padding contributes exactly 0.
        pad = ((0, 0), (0, b_pad - batch))
        preds_t = jnp.pad(preds_t, pad, constant_values=1.0)
        labels_t = jnp.pad(labels_t, pad, constant_values=1.0)
    preds_r = preds_t.reshape(ROWS, cols_pad)       # free: contiguous reshape in HBM
    labels_r = labels_t.reshape(ROWS, cols_pad)     # task t owns rows 8t .. 8t+7

    in_spec = pl.BlockSpec((ROWS, tbc), lambda c, j: (0, c * steps + j))
    out = pl.pallas_call(
        _bce_sum_kernel,
        out_shape=jax.ShapeDtypeStruct((ncores, ROWS, 1), jnp.float32),
        grid=(ncores, steps),
        in_specs=[in_spec, in_spec],
        out_specs=pl.BlockSpec((None, ROWS, 1), lambda c, j: (c, 0, 0)),
        compiler_params=pltpu.CompilerParams(
            dimension_semantics=("parallel", "arbitrary"),
            vmem_limit_bytes=32 * 1024 * 1024),
    )(preds_r, labels_r)                            # (ncores, ROWS, 1)

    # Merge cores + the 8-row groups per task outside the kernel (tiny).
    return jnp.sum(out.reshape(-1, NUM_TASKS, 8), axis=(0, 2))       # (NUM_TASKS,)


@functools.partial(jax.jit, static_argnames=("ema_alpha", "is_train"))
def multi_object_loss(preds_t, labels_t, a, b, s, w, *, ema_alpha, is_train=True):
    """Task-major entry point.  preds_t / labels_t: (NUM_TASKS, B)."""
    batch = preds_t.shape[1]
    task_sums = _bce_task_sums(preds_t.astype(jnp.float32),
                               labels_t.astype(jnp.float32))
    losses = task_sums / jnp.float32(batch)          # per-task BCE mean
    if is_train:
        a = ema_alpha * a + (1.0 - ema_alpha) * losses * losses
        b = ema_alpha * b + (1.0 - ema_alpha) * losses
        # Clamp variance at 0: EMA rounding can make a - b^2 slightly negative.
        s = jnp.maximum(jnp.sqrt(jnp.maximum(a - b * b, 0.0)), 1e-5)
        inv_s = 1.0 / s
        w = (float(NUM_TASKS) * inv_s) / jnp.sum(inv_s)
    total = jnp.sum(w * losses)
    return total, losses, a, b, s, w


@functools.partial(jax.jit, static_argnames=("ema_alpha", "is_train"))
def multi_object_loss_from_heads(outputs, labels, a, b, s, w, *, ema_alpha, is_train=True):
    """Torch-style interface: outputs = list of 5 (B, >=1) prob tensors, labels (B, 5)."""
    # TODO(synk): this stack/transpose is a relayout copy imposed by the torch-style
    # interface; feed task-major (5, B) tensors upstream to avoid it entirely.
    preds_t = jnp.stack([o[:, 0] for o in outputs], axis=0).astype(jnp.float32)
    labels_t = jnp.transpose(labels.astype(jnp.float32))
    return multi_object_loss(preds_t, labels_t, a, b, s, w,
                             ema_alpha=ema_alpha, is_train=is_train)


class MultiObjectLoss:
    """Forward-pass equivalent of the PyTorch module (EMA state kept as jnp arrays)."""

    def __init__(self, ema_alpha):
        self.ema_alpha = float(ema_alpha)
        self.a = jnp.zeros((NUM_TASKS,), jnp.float32)
        self.b = jnp.zeros((NUM_TASKS,), jnp.float32)
        self.s = jnp.zeros((NUM_TASKS,), jnp.float32)
        self.weights = jnp.ones((NUM_TASKS,), jnp.float32)

    def forward(self, outputs, labels, is_train=True):
        total, _losses, a, b, s, w = multi_object_loss_from_heads(
            outputs, labels, self.a, self.b, self.s, self.weights,
            ema_alpha=self.ema_alpha, is_train=is_train)
        if is_train:
            # torch.no_grad() state update: done functionally, stored by the wrapper.
            self.a, self.b, self.s, self.weights = a, b, s, w
        return total


def _reference(preds, labels, a, b, w, ema_alpha, is_train=True):
    """Pure-JAX reference mirroring the PyTorch semantics (preds/labels: (B, 5))."""
    lp = jnp.maximum(jnp.log(preds), -100.0)
    l1p = jnp.maximum(jnp.log(1.0 - preds), -100.0)
    losses = jnp.mean(-(labels * lp + (1.0 - labels) * l1p), axis=0)   # (5,)
    s = jnp.zeros_like(a)
    if is_train:
        a = ema_alpha * a + (1.0 - ema_alpha) * losses ** 2
        b = ema_alpha * b + (1.0 - ema_alpha) * losses
        s = jnp.maximum(jnp.sqrt(jnp.maximum(a - b ** 2, 0.0)), 1e-5)
        w = (NUM_TASKS / s) / jnp.sum(1.0 / s)
    return jnp.sum(w * losses), losses, a, b, s, w


if __name__ == "__main__":
    key = jax.random.PRNGKey(0)
    ema_alpha = 0.9

    def make_case(batch):
        k_out, k_lab = jax.random.split(jax.random.fold_in(key, batch))
        k_outs = jax.random.split(k_out, NUM_TASKS)
        outputs = [jax.nn.sigmoid(jax.random.normal(k_outs[i], (batch, 1), jnp.float32))
                   for i in range(NUM_TASKS)]
        labels = jax.random.bernoulli(k_lab, 0.5, (batch, NUM_TASKS)).astype(jnp.float32)
        return outputs, labels

    # ---- Case 1: tiny batch via the torch-style class (train + eval). ----
    B = 8
    outputs, labels = make_case(B)
    mod = MultiObjectLoss(ema_alpha)

    preds = jnp.concatenate([o[:, 0:1] for o in outputs], axis=1)       # (B, 5)
    ref_total, ref_losses, ref_a, ref_b, ref_s, ref_w = _reference(
        preds, labels, jnp.zeros(NUM_TASKS), jnp.zeros(NUM_TASKS),
        jnp.ones(NUM_TASKS), ema_alpha, is_train=True)

    total = jax.block_until_ready(mod.forward(outputs, labels, is_train=True))
    assert jnp.allclose(total, ref_total, atol=1e-5, rtol=1e-5), (total, ref_total)
    assert jnp.allclose(mod.a, ref_a, atol=1e-5, rtol=1e-5)
    assert jnp.allclose(mod.b, ref_b, atol=1e-5, rtol=1e-5)
    assert jnp.allclose(mod.s, ref_s, atol=1e-5, rtol=1e-5)
    assert jnp.allclose(mod.weights, ref_w, atol=1e-5, rtol=1e-5)

    # Eval path: state frozen, total = sum(updated_w * losses).
    eval_total = jax.block_until_ready(mod.forward(outputs, labels, is_train=False))
    assert jnp.allclose(eval_total, jnp.sum(ref_w * ref_losses), atol=1e-5, rtol=1e-5)

    # ---- Case 2: larger batch, task-major entry (2-core grid + column padding). ----
    B2 = 2056
    outputs2, labels2 = make_case(B2)
    preds2 = jnp.concatenate([o[:, 0:1] for o in outputs2], axis=1)     # (B2, 5)
    total2, losses2, a2, b2, s2, w2 = multi_object_loss(
        jnp.transpose(preds2), jnp.transpose(labels2),
        jnp.zeros(NUM_TASKS), jnp.zeros(NUM_TASKS), jnp.zeros(NUM_TASKS),
        jnp.ones(NUM_TASKS), ema_alpha=ema_alpha, is_train=True)
    total2 = jax.block_until_ready(total2)
    r_total2, r_losses2, r_a2, r_b2, r_s2, r_w2 = _reference(
        preds2, labels2, jnp.zeros(NUM_TASKS), jnp.zeros(NUM_TASKS),
        jnp.ones(NUM_TASKS), ema_alpha, is_train=True)
    assert jnp.allclose(total2, r_total2, atol=2e-5, rtol=1e-4), (total2, r_total2)
    assert jnp.allclose(losses2, r_losses2, atol=2e-5, rtol=1e-4)
    assert jnp.allclose(w2, r_w2, atol=2e-5, rtol=1e-4)

    print("KERNEL_OK")
</pallas_src>

<mosaic_0001>
module attributes {stable_mosaic.version = 11 : i64} {
  func.func @_bce_sum_kernel(%arg0: i32, %arg1: i32, %arg2: memref<40x128xf32, #tpu.memory_space<vmem>>, %arg3: memref<40x128xf32, #tpu.memory_space<vmem>>, %arg4: memref<1x40x1xf32, #tpu.memory_space<vmem>>) attributes {dimension_semantics = [#tpu.dimension_semantics<parallel>, #tpu.dimension_semantics<arbitrary>], iteration_bounds = array<i64: 1, 1>, scalar_prefetch = 0 : i64, scratch_operands = 0 : i64, tpu.core_type = #tpu.core_type<tc>, window_params = [{transform_indices = @transform_0, window_bounds = array<i64: 40, 128>}, {transform_indices = @transform_1, window_bounds = array<i64: 40, 128>}, {transform_indices = @transform_2, window_bounds = array<i64: 1, 40, 1>}]} {
    %c0_i32 = arith.constant 0 : i32
    %0 = arith.cmpi eq, %arg1, %c0_i32 : i32
    %1 = arith.extui %0 : i1 to i32
    %c0_i32_0 = arith.constant 0 : i32
    %2 = arith.cmpi ne, %1, %c0_i32_0 : i32
    scf.if %2 {
      %cst_15 = arith.constant 0.000000e+00 : f32
      %28 = vector.broadcast %cst_15 : f32 to vector<40x1xf32>
      %c0_16 = arith.constant 0 : index
      %c0_17 = arith.constant 0 : index
      %c0_18 = arith.constant 0 : index
      %29 = vector.load %arg4[%c0_16, %c0_17, %c0_18] : memref<1x40x1xf32, #tpu.memory_space<vmem>>, vector<1x40x1xf32>
      %30 = vector.shape_cast %29 : vector<1x40x1xf32> to vector<40x1xf32>
      %31 = vector.shape_cast %28 : vector<40x1xf32> to vector<1x40x1xf32>
      tpu.vector_store %arg4[%c0_16, %c0_17, %c0_18], %31 {strides = array<i32>} : memref<1x40x1xf32, #tpu.memory_space<vmem>>, vector<1x40x1xf32>,
    } else {
    }
    %c0 = arith.constant 0 : index
    %c0_1 = arith.constant 0 : index
    %3 = vector.load %arg2[%c0, %c0_1] : memref<40x128xf32, #tpu.memory_space<vmem>>, vector<40x128xf32>
    %c0_2 = arith.constant 0 : index
    %c0_3 = arith.constant 0 : index
    %4 = vector.load %arg3[%c0_2, %c0_3] : memref<40x128xf32, #tpu.memory_space<vmem>>, vector<40x128xf32>
    %5 = math.log %3 : vector<40x128xf32>
    %cst = arith.constant -1.000000e+02 : f32
    %6 = vector.broadcast %cst : f32 to vector<40x128xf32>
    %7 = arith.maximumf %5, %6 : vector<40x128xf32>
    %cst_4 = arith.constant 1.000000e+00 : f32
    %8 = vector.broadcast %cst_4 : f32 to vector<40x128xf32>
    %9 = arith.subf %8, %3 : vector<40x128xf32>
    %10 = math.log %9 : vector<40x128xf32>
    %cst_5 = arith.constant -1.000000e+02 : f32
    %11 = vector.broadcast %cst_5 : f32 to vector<40x128xf32>
    %12 = arith.maximumf %10, %11 : vector<40x128xf32>
    %13 = arith.mulf %4, %7 : vector<40x128xf32>
    %cst_6 = arith.constant 1.000000e+00 : f32
    %14 = vector.broadcast %cst_6 : f32 to vector<40x128xf32>
    %15 = arith.subf %14, %4 : vector<40x128xf32>
    %16 = arith.mulf %15, %12 : vector<40x128xf32>
    %17 = arith.addf %13, %16 : vector<40x128xf32>
    %cst_7 = arith.constant 0.000000e+00 : f32
    %18 = vector.broadcast %cst_7 : f32 to vector<40x128xf32>
    %19 = arith.subf %18, %17 : vector<40x128xf32>
    %c0_8 = arith.constant 0 : index
    %c0_9 = arith.constant 0 : index
    %c0_10 = arith.constant 0 : index
    %20 = vector.load %arg4[%c0_8, %c0_9, %c0_10] : memref<1x40x1xf32, #tpu.memory_space<vmem>>, vector<1x40x1xf32>
    %21 = vector.shape_cast %20 : vector<1x40x1xf32> to vector<40x1xf32>
    %cst_11 = arith.constant dense<0.000000e+00> : vector<40xf32>
    %22 = vector.multi_reduction <add>, %19, %cst_11 [1] : vector<40x128xf32> to vector<40xf32>
    %23 = vector.shape_cast %22 : vector<40xf32> to vector<40x1xf32>
    %24 = arith.addf %21, %23 : vector<40x1xf32>
    %c0_12 = arith.constant 0 : index
    %c0_13 = arith.constant 0 : index
    %c0_14 = arith.constant 0 : index
    %25 = vector.load %arg4[%c0_12, %c0_13, %c0_14] : memref<1x40x1xf32, #tpu.memory_space<vmem>>, vector<1x40x1xf32>
    %26 = vector.shape_cast %25 : vector<1x40x1xf32> to vector<40x1xf32>
    %27 = vector.shape_cast %24 : vector<40x1xf32> to vector<1x40x1xf32>
    tpu.vector_store %arg4[%c0_12, %c0_13, %c0_14], %27 {strides = array<i32>} : memref<1x40x1xf32, #tpu.memory_space<vmem>>, vector<1x40x1xf32>,
    return
  }
  func.func @transform_0(%arg0: i32, %arg1: i32) -> (i32, i32) {
    %c1_i32 = arith.constant 1 : i32
    %0 = arith.muli %arg0, %c1_i32 : i32
    %1 = arith.addi %0, %arg1 : i32
    %c0_i32 = arith.constant 0 : i32
    %c0_i32_0 = arith.constant 0 : i32
    return %c0_i32, %1 : i32, i32
  }
  func.func @transform_1(%arg0: i32, %arg1: i32) -> (i32, i32) {
    %c1_i32 = arith.constant 1 : i32
    %0 = arith.muli %arg0, %c1_i32 : i32
    %1 = arith.addi %0, %arg1 : i32
    %c0_i32 = arith.constant 0 : i32
    %c0_i32_0 = arith.constant 0 : i32
    return %c0_i32, %1 : i32, i32
  }
  func.func @transform_2(%arg0: i32, %arg1: i32) -> (i32, i32, i32) {
    %c0_i32 = arith.constant 0 : i32
    %c0_i32_0 = arith.constant 0 : i32
    %c0_i32_1 = arith.constant 0 : i32
    return %arg0, %c0_i32, %c0_i32_0 : i32, i32, i32
  }
}

</mosaic_0001>

<bundles_post_ra>
// kernel: multi_object_loss.1
= control target key start
LH: loop header
LB: loop body
LE: loop exit
PB: predicated region body
PF: predicated region fallthrough
CT: control target
= control target key end

     0   :  { %vm49_vm0 = vcmask 7168   ;;  %v188_v2 = vmov 0.0   ;;  %s289_s0 = inlined_call_operand.vmem [shape: f32[40,128], index: 0, kind: input, shape index: {}]   ;;  %s290_s2 = inlined_call_operand.vmem [shape: f32[1,40,1], index: 2, kind: output, shape index: {}]   ;;  %s291_s1 = inlined_call_operand.vmem [shape: f32[40,128], index: 1, kind: input, shape index: {}]  }
   0x1   :  { %v57_v0 = vld [vmem:[%s289_s0 + $0x10] sm:$0xff]  ;;  %v55_v1 = vld [vmem:[%s289_s0] sm:$0xff]  ;;  %52 = vst.msk [vmem:[%s290_s2 + $0x10] sm:$0xff] %vm49_vm0, %v188_v2  ;;  %v58_v7 = vld [vmem:[%s289_s0 + $0x18] sm:$0xff] }
   0x2   :  { %168 = vlog2.f32 %v57_v0  ;;  %v82_v3 = vsub.f32 1.0, %v57_v0  ;;  %v80_v4 = vsub.f32 1.0, %v55_v1  ;;  %v59_v5 = vld [vmem:[%s289_s0 + $0x20] sm:$0xff]  ;;  %v56_v8 = vld [vmem:[%s289_s0 + $0x8] sm:$0xff]  ;;  %50 = vst.msk [vmem:[%s290_s2] sm:$0xff] %vm49_vm0, %v188_v2  ;;  %v83_v9 = vsub.f32 1.0, %v58_v7 }
   0x3   :  { %170 = vlog2.f32 %v55_v1  ;;  %v84_v6 = vsub.f32 1.0, %v59_v5  ;;  %51 = vst.msk [vmem:[%s290_s2 + $0x8] sm:$0xff] %vm49_vm0, %v188_v2  ;;  %v81_v10 = vsub.f32 1.0, %v56_v8  ;;  %v62_v12 = vld [vmem:[%s291_s1 + $0x10] sm:$0xff]  ;;  %v60_v15 = vld [vmem:[%s291_s1] sm:$0xff]  ;;  %v63_v27 = vld [vmem:[%s291_s1 + $0x18] sm:$0xff] }
   0x4   :  { %172 = vlog2.f32 %v82_v3  ;;  %53 = vst.msk [vmem:[%s290_s2 + $0x18] sm:$0xff] %vm49_vm0, %v188_v2  ;;  %v107_v21 = vsub.f32 1.0, %v62_v12  ;;  %v64_v22 = vld [vmem:[%s291_s1 + $0x20] sm:$0xff]  ;;  %v105_v26 = vsub.f32 1.0, %v60_v15  ;;  %v61_v32 = vld [vmem:[%s291_s1 + $0x8] sm:$0xff]  ;;  %v108_v42 = vsub.f32 1.0, %v63_v27 }
   0x5   :  { %174 = vlog2.f32 %v80_v4  ;;  %54 = vst.msk [vmem:[%s290_s2 + $0x20] sm:$0xff] %vm49_vm0, %v188_v2  ;;  %v109_v37 = vsub.f32 1.0, %v64_v22  ;;  %v106_v47 = vsub.f32 1.0, %v61_v32 }
   0x6   :  { %176 = vlog2.f32 %v59_v5 }
   0x7   :  { %178 = vlog2.f32 %v84_v6 }
   0x8   :  { %v169_v11 = vpop.eup %168  ;;  %180 = vlog2.f32 %v58_v7  ;;  %v127_v7 = vld [vmem:[%s290_s2 + $0x10] sm:$0xff] }
   0x9   :  { %v171_v13 = vpop.eup %170  ;;  %v70_v14 = vmul.f32 0.6931472, %v169_v11  ;;  %182 = vlog2.f32 %v83_v9 }
   0xa   :  { %v173_v16 = vpop.eup %172  ;;  %v66_v17 = vmul.f32 0.6931472, %v171_v13  ;;  %184 = vlog2.f32 %v56_v8  ;;  %v125_v8 = vld [vmem:[%s290_s2] sm:$0xff] }
   0xb   :  { %v175_v18 = vpop.eup %174  ;;  %v77_v19 = vmax.f32 %v70_v14, -100.0  ;;  %v90_v20 = vmul.f32 0.6931472, %v173_v16  ;;  %186 = vlog2.f32 %v81_v10  ;;  %v128_v16 = vld [vmem:[%s290_s2 + $0x18] sm:$0xff] }
   0xc   :  { %v177_v23 = vpop.eup %176  ;;  %v75_v24 = vmax.f32 %v66_v17, -100.0  ;;  %v86_v25 = vmul.f32 0.6931472, %v175_v18  ;;  %v126_v17 = vld [vmem:[%s290_s2 + $0x8] sm:$0xff] }
   0xd   :  { %v179_v28 = vpop.eup %178  ;;  %v97_v29 = vmax.f32 %v90_v20, -100.0  ;;  %v102_v30 = vmul.f32 %v77_v19, %v62_v12  ;;  %v74_v31 = vmul.f32 0.6931472, %v177_v23  ;;  %v129_v12 = vld [vmem:[%s290_s2 + $0x20] sm:$0xff] }
   0xe   :  { %v181_v33 = vpop.eup %180  ;;  %v95_v34 = vmax.f32 %v86_v25, -100.0  ;;  %v100_v35 = vmul.f32 %v75_v24, %v60_v15  ;;  %v94_v36 = vmul.f32 0.6931472, %v179_v28 }
   0xf   :  { %v183_v38 = vpop.eup %182  ;;  %v112_v39 = vmul.f32 %v107_v21, %v97_v29  ;;  %v79_v40 = vmax.f32 %v74_v31, -100.0  ;;  %v72_v41 = vmul.f32 0.6931472, %v181_v33 }
  0x10   :  { %v185_v43 = vpop.eup %184  ;;  %v110_v44 = vmul.f32 %v105_v26, %v95_v34  ;;  %v99_v45 = vmax.f32 %v94_v36, -100.0  ;;  %v92_v46 = vmul.f32 0.6931472, %v183_v38 }
  0x11   :  { %v187_v48 = vpop.eup %186  ;;  %v117_v49 = vadd.f32 %v112_v39, %v102_v30  ;;  %v104_v50 = vmul.f32 %v79_v40, %v64_v22  ;;  %v78_v51 = vmax.f32 %v72_v41, -100.0  ;;  %v68_v52 = vmul.f32 0.6931472, %v185_v43 }
  0x12   :  { %v115_v53 = vadd.f32 %v110_v44, %v100_v35  ;;  %v114_v54 = vmul.f32 %v109_v37, %v99_v45  ;;  %v98_v55 = vmax.f32 %v92_v46, -100.0  ;;  %v88_v56 = vmul.f32 0.6931472, %v187_v48 }
  0x13   :  { %v122_v57 = vsub.f32 0.0, %v117_v49  ;;  %v103_v58 = vmul.f32 %v78_v51, %v63_v27  ;;  %v76_v59 = vmax.f32 %v68_v52, -100.0 }
  0x14   :  { %v120_v60 = vsub.f32 0.0, %v115_v53  ;;  %v119_v61 = vadd.f32 %v114_v54, %v104_v50  ;;  %v113_v62 = vmul.f32 %v108_v42, %v98_v55  ;;  %v96_v63 = vmax.f32 %v88_v56, -100.0 }
  0x15   :  { %134 = vadd.xlane.f32.xlu1 %v122_v57  ;;  %v101_v0 = vmul.f32 %v76_v59, %v61_v32 }
  0x16   :  { %130 = vadd.xlane.f32.xlu0 %v120_v60  ;;  %v124_v1 = vsub.f32 0.0, %v119_v61  ;;  %v118_v2 = vadd.f32 %v113_v62, %v103_v58  ;;  %v111_v3 = vmul.f32 %v106_v47, %v96_v63 }
  0x18   :  { %138 = vadd.xlane.f32.xlu2 %v124_v1  ;;  %v116_v4 = vadd.f32 %v111_v3, %v101_v0  ;;  %v123_v5 = vsub.f32 0.0, %v118_v2 }
  0x1a   :  { %v121_v6 = vsub.f32 0.0, %v116_v4 }
  0x1d   :  { %136 = vadd.xlane.f32.xlu1 %v123_v5 }
  0x1e   :  { %132 = vadd.xlane.f32.xlu0 %v121_v6 }
  0x88   :  { %v135_v9 = vpop.xlane.xlu1 %134 }
  0x89   :  { %v142_v10 = vadd.f32 %v135_v9, %v127_v7  ;;  %v131_v11 = vpop.xlane.xlu0 %130 }
  0x8a   :  { %v140_v13 = vadd.f32 %v131_v11, %v125_v8 }
  0x8b   :  { %148 = vst.msk [vmem:[%s290_s2 + $0x10] sm:$0xff] %vm49_vm0, %v142_v10  ;;  %v139_v14 = vpop.xlane.xlu2 %138 }
  0x8c   :  { %146 = vst.msk [vmem:[%s290_s2] sm:$0xff] %vm49_vm0, %v140_v13  ;;  %v144_v15 = vadd.f32 %v139_v14, %v129_v12 }
  0x8e   :  { %150 = vst.msk [vmem:[%s290_s2 + $0x20] sm:$0xff] %vm49_vm0, %v144_v15 }
  0x90   :  { %v137_v18 = vpop.xlane.xlu1 %136 }
  0x91   :  { %v143_v19 = vadd.f32 %v137_v18, %v128_v16  ;;  %v133_v20 = vpop.xlane.xlu0 %132 }
  0x92   :  { %v141_v21 = vadd.f32 %v133_v20, %v126_v17 }
  0x93   :  { %149 = vst.msk [vmem:[%s290_s2 + $0x18] sm:$0xff] %vm49_vm0, %v143_v19 }
  0x94   :  { %147 = vst.msk [vmem:[%s290_s2 + $0x8] sm:$0xff] %vm49_vm0, %v141_v21 }

</bundles_post_ra>
